<compile_context>
chip_gen: v7x
topology: tpu7x:2x2x1
jax: 0.10.0
libtpu: 0.0.40
codegen_flags: <defaults>
</compile_context>

<pallas_src>
import math

import jax
import jax.numpy as jnp
from jax import lax
from jax.experimental import pallas as pl
from jax.experimental.pallas import tpu as pltpu


def _round_up(x, m):
    return (x + m - 1) // m * m


def _sparse_linear_kernel(x_ref, w_ref, m_ref, b_ref, o_ref, acc_ref):
    # Zero the f32 accumulator at the first K step.
    @pl.when(pl.program_id(2) == 0)
    def _():
        acc_ref[...] = jnp.zeros_like(acc_ref)

    # Elementwise sparsity mask (VPU), then MXU matmul without any transpose:
    # x tile is (tm, tk), masked weight tile is (tn, tk); contract both last
    # dims -> (tm, tn).
    masked_w = w_ref[...] * m_ref[...]
    acc_ref[...] += lax.dot_general(
        x_ref[...],
        masked_w,
        dimension_numbers=(((1,), (1,)), ((), ())),
        preferred_element_type=jnp.float32,
    )

    # Add bias and write the output tile only on the last K step.
    @pl.when(pl.program_id(2) == pl.num_programs(2) - 1)
    def _():
        o_ref[...] = (acc_ref[...] + b_ref[...]).astype(o_ref.dtype)


def sparse_linear_v2(x, weight, mask, bias, *, tm=256, tn=256, tk=512):
    """x: (B, in), weight/mask: (out, in), bias: (out,) -> (B, out)."""
    B, K = x.shape
    N = weight.shape[0]

    # Effective tile sizes: lane-dense (multiples of 128) on N/K, multiple of 8
    # on M, clipped to the (padded) problem size.
    tm_eff = min(tm, _round_up(B, 8))
    tn_eff = min(tn, _round_up(N, 128))
    tk_eff = min(tk, _round_up(K, 128))

    Bp = _round_up(B, tm_eff)
    Np = _round_up(N, tn_eff)
    Kp = _round_up(K, tk_eff)

    # Zero-pad to tile multiples (zero K-padding contributes nothing to the
    # dot; padded rows/cols are sliced off at the end).
    x_p = jnp.pad(x, ((0, Bp - B), (0, Kp - K)))
    w_p = jnp.pad(weight, ((0, Np - N), (0, Kp - K)))
    m_p = jnp.pad(mask, ((0, Np - N), (0, Kp - K)))
    b_p = jnp.pad(bias, (0, Np - N)).reshape(1, Np)

    grid = (Bp // tm_eff, Np // tn_eff, Kp // tk_eff)

    flops = 2 * Bp * Kp * Np + Np * Kp * grid[0]  # matmul + mask multiplies
    bytes_accessed = 4 * (
        Bp * Kp * grid[1]          # x tiles re-read per N step
        + 2 * Np * Kp * grid[0]    # weight + mask tiles re-read per M step
        + Bp * Np                  # output
        + Np                       # bias
    )

    out_p = pl.pallas_call(
        _sparse_linear_kernel,
        out_shape=jax.ShapeDtypeStruct((Bp, Np), x.dtype),
        grid_spec=pltpu.PrefetchScalarGridSpec(
            num_scalar_prefetch=0,
            grid=grid,
            in_specs=[
                pl.BlockSpec((tm_eff, tk_eff), lambda i, j, k: (i, k)),  # x
                pl.BlockSpec((tn_eff, tk_eff), lambda i, j, k: (j, k)),  # weight
                pl.BlockSpec((tn_eff, tk_eff), lambda i, j, k: (j, k)),  # mask
                pl.BlockSpec((1, tn_eff), lambda i, j, k: (0, j)),       # bias
            ],
            out_specs=pl.BlockSpec((tm_eff, tn_eff), lambda i, j, k: (i, j)),
            scratch_shapes=[pltpu.VMEM((tm_eff, tn_eff), jnp.float32)],
        ),
        compiler_params=pltpu.CompilerParams(
            dimension_semantics=("parallel", "parallel", "arbitrary"),
        ),
        cost_estimate=pl.CostEstimate(
            flops=flops, transcendentals=0, bytes_accessed=bytes_accessed
        ),
    )(x_p, w_p, m_p, b_p)

    return out_p[:B, :N]


def init_sparse_linear_params(key, in_features, out_features, sparsity=0.5):
    """Deterministic re-implementation of SparseLinearV2.reset_parameters."""
    k_w, k_b, k_m = jax.random.split(key, 3)

    # kaiming_uniform_(a=sqrt(5)) on (out, in) -> U(-1/sqrt(fan_in), 1/sqrt(fan_in))
    fan_in = in_features
    w_bound = math.sqrt(6.0 / ((1.0 + 5.0) * fan_in))
    weight = jax.random.uniform(
        k_w, (out_features, in_features), jnp.float32, -w_bound, w_bound
    )

    b_bound = 1.0 / math.sqrt(fan_in)
    bias = jax.random.uniform(k_b, (out_features,), jnp.float32, -b_bound, b_bound)

    # mask ~ U(0,1), then torch.threshold(x, sparsity, 0): keep x if x > sparsity
    mask_raw = jax.random.uniform(
        k_m, (out_features, in_features), jnp.float32, 0.0, 1.0
    )
    mask = jnp.where(mask_raw > sparsity, mask_raw, 0.0)

    return weight, bias, mask


if __name__ == "__main__":
    key = jax.random.PRNGKey(0)
    k_params, k_x, k_params2, k_x2 = jax.random.split(key, 4)

    # Case 1: aligned shapes, tiles chosen so the grid has multiple N and K
    # steps (exercises the accumulator / bias-finalize path).
    batch, in_features, out_features = 16, 512, 512
    weight, bias, mask = init_sparse_linear_params(
        k_params, in_features, out_features, sparsity=0.5
    )
    x = jax.random.normal(k_x, (batch, in_features), jnp.float32)

    out = sparse_linear_v2(x, weight, mask, bias, tm=128, tn=256, tk=256)
    out = jax.block_until_ready(out)
    ref = x @ (weight * mask).T + bias
    assert out.shape == (batch, out_features)
    assert jnp.allclose(out, ref, atol=1e-5, rtol=1e-5)

    # Case 2: ragged shapes (exercises the zero-padding path).
    batch2, in2, out2 = 10, 192, 200
    weight2, bias2, mask2 = init_sparse_linear_params(
        k_params2, in2, out2, sparsity=0.5
    )
    x2 = jax.random.normal(k_x2, (batch2, in2), jnp.float32)

    out_r = sparse_linear_v2(x2, weight2, mask2, bias2)
    out_r = jax.block_until_ready(out_r)
    ref_r = x2 @ (weight2 * mask2).T + bias2
    assert out_r.shape == (batch2, out2)
    assert jnp.allclose(out_r, ref_r, atol=1e-5, rtol=1e-5)

    print("KERNEL_OK")
</pallas_src>

<mosaic_0001>
module attributes {stable_mosaic.version = 11 : i64} {
  func.func @_sparse_linear_kernel(%arg0: i32, %arg1: i32, %arg2: i32, %arg3: memref<16x256xf32, #tpu.memory_space<vmem>>, %arg4: memref<256x256xf32, #tpu.memory_space<vmem>>, %arg5: memref<256x256xf32, #tpu.memory_space<vmem>>, %arg6: memref<1x256xf32, #tpu.memory_space<vmem>>, %arg7: memref<16x256xf32, #tpu.memory_space<vmem>>, %arg8: memref<16x256xf32, #tpu.memory_space<vmem>>) attributes {dimension_semantics = [#tpu.dimension_semantics<parallel>, #tpu.dimension_semantics<parallel>, #tpu.dimension_semantics<arbitrary>], iteration_bounds = array<i64: 1, 2, 2>, scalar_prefetch = 0 : i64, scratch_operands = 1 : i64, tpu.core_type = #tpu.core_type<tc>, window_params = [{transform_indices = @transform_0, window_bounds = array<i64: 16, 256>}, {transform_indices = @transform_1, window_bounds = array<i64: 256, 256>}, {transform_indices = @transform_2, window_bounds = array<i64: 256, 256>}, {transform_indices = @transform_3, window_bounds = array<i64: 1, 256>}, {transform_indices = @transform_4, window_bounds = array<i64: 16, 256>}]} {
    %c0_i32 = arith.constant 0 : i32
    %0 = arith.cmpi eq, %arg2, %c0_i32 : i32
    %1 = arith.extui %0 : i1 to i32
    %c0_i32_0 = arith.constant 0 : i32
    %2 = arith.cmpi ne, %1, %c0_i32_0 : i32
    scf.if %2 {
      %cst_11 = arith.constant 0.000000e+00 : f32
      %14 = vector.broadcast %cst_11 : f32 to vector<16x256xf32>
      %c0_12 = arith.constant 0 : index
      %c0_13 = arith.constant 0 : index
      %15 = vector.load %arg8[%c0_12, %c0_13] : memref<16x256xf32, #tpu.memory_space<vmem>>, vector<16x256xf32>
      tpu.vector_store %arg8[%c0_12, %c0_13], %14 {strides = array<i32>} : memref<16x256xf32, #tpu.memory_space<vmem>>, vector<16x256xf32>,
    } else {
    }
    %c0 = arith.constant 0 : index
    %c0_1 = arith.constant 0 : index
    %3 = vector.load %arg4[%c0, %c0_1] : memref<256x256xf32, #tpu.memory_space<vmem>>, vector<256x256xf32>
    %c0_2 = arith.constant 0 : index
    %c0_3 = arith.constant 0 : index
    %4 = vector.load %arg5[%c0_2, %c0_3] : memref<256x256xf32, #tpu.memory_space<vmem>>, vector<256x256xf32>
    %5 = arith.mulf %3, %4 : vector<256x256xf32>
    %c0_4 = arith.constant 0 : index
    %c0_5 = arith.constant 0 : index
    %6 = vector.load %arg8[%c0_4, %c0_5] : memref<16x256xf32, #tpu.memory_space<vmem>>, vector<16x256xf32>
    %c0_6 = arith.constant 0 : index
    %c0_7 = arith.constant 0 : index
    %7 = vector.load %arg3[%c0_6, %c0_7] : memref<16x256xf32, #tpu.memory_space<vmem>>, vector<16x256xf32>
    %cst = arith.constant dense<0.000000e+00> : vector<16x256xf32>
    %8 = tpu.matmul %7, %5, %cst {dimension_numbers = #tpu.dot_dimension_numbers<[1], [1], [0], [0], [0, 0, 1, 0], [], []>} : vector<16x256xf32>, vector<256x256xf32>, vector<16x256xf32> -> vector<16x256xf32>
    %9 = arith.addf %6, %8 : vector<16x256xf32>
    %c0_8 = arith.constant 0 : index
    %c0_9 = arith.constant 0 : index
    %10 = vector.load %arg8[%c0_8, %c0_9] : memref<16x256xf32, #tpu.memory_space<vmem>>, vector<16x256xf32>
    tpu.vector_store %arg8[%c0_8, %c0_9], %9 {strides = array<i32>} : memref<16x256xf32, #tpu.memory_space<vmem>>, vector<16x256xf32>,
    %c1_i32 = arith.constant 1 : i32
    %11 = arith.cmpi eq, %arg2, %c1_i32 : i32
    %12 = arith.extui %11 : i1 to i32
    %c0_i32_10 = arith.constant 0 : i32
    %13 = arith.cmpi ne, %12, %c0_i32_10 : i32
    scf.if %13 {
      %c0_11 = arith.constant 0 : index
      %c0_12 = arith.constant 0 : index
      %14 = vector.load %arg8[%c0_11, %c0_12] : memref<16x256xf32, #tpu.memory_space<vmem>>, vector<16x256xf32>
      %c0_13 = arith.constant 0 : index
      %c0_14 = arith.constant 0 : index
      %15 = vector.load %arg6[%c0_13, %c0_14] : memref<1x256xf32, #tpu.memory_space<vmem>>, vector<1x256xf32>
      %16 = vector.broadcast %15 : vector<1x256xf32> to vector<16x256xf32>
      %17 = arith.addf %14, %16 : vector<16x256xf32>
      %c0_15 = arith.constant 0 : index
      %c0_16 = arith.constant 0 : index
      %18 = vector.load %arg7[%c0_15, %c0_16] : memref<16x256xf32, #tpu.memory_space<vmem>>, vector<16x256xf32>
      tpu.vector_store %arg7[%c0_15, %c0_16], %17 {strides = array<i32>} : memref<16x256xf32, #tpu.memory_space<vmem>>, vector<16x256xf32>,
    } else {
    }
    return
  }
  func.func @transform_0(%arg0: i32, %arg1: i32, %arg2: i32) -> (i32, i32) {
    %c0_i32 = arith.constant 0 : i32
    return %arg0, %arg2 : i32, i32
  }
  func.func @transform_1(%arg0: i32, %arg1: i32, %arg2: i32) -> (i32, i32) {
    %c0_i32 = arith.constant 0 : i32
    return %arg1, %arg2 : i32, i32
  }
  func.func @transform_2(%arg0: i32, %arg1: i32, %arg2: i32) -> (i32, i32) {
    %c0_i32 = arith.constant 0 : i32
    return %arg1, %arg2 : i32, i32
  }
  func.func @transform_3(%arg0: i32, %arg1: i32, %arg2: i32) -> (i32, i32) {
    %c0_i32 = arith.constant 0 : i32
    %c0_i32_0 = arith.constant 0 : i32
    return %c0_i32, %arg1 : i32, i32
  }
  func.func @transform_4(%arg0: i32, %arg1: i32, %arg2: i32) -> (i32, i32) {
    %c0_i32 = arith.constant 0 : i32
    return %arg0, %arg1 : i32, i32
  }
}

</mosaic_0001>

<bundles_post_ra>
// kernel: tpu_custom_call.1
= control target key start
LH: loop header
LB: loop body
LE: loop exit
PB: predicated region body
PF: predicated region fallthrough
CT: control target
= control target key end

     0   :  { %s1941_s0 = inlined_call_operand.hbm [shape: f32[16,512], index: 0, kind: input, shape index: {}]   ;;  %s1942_s1 = inlined_call_operand.hbm [shape: f32[512,512], index: 1, kind: input, shape index: {}]   ;;  %s1943_s2 = inlined_call_operand.hbm [shape: f32[512,512], index: 2, kind: input, shape index: {}]   ;;  %s1944_s3 = inlined_call_operand.vmem [shape: f32[1,512], index: 3, kind: input, shape index: {}]   ;;  %s1945_s4 = inlined_call_operand.hbm [shape: f32[16,512], index: 4, kind: output, shape index: {}]  }
   0x1   :  { %1970 = sst [smem:[#allocation25_spill]] %s1942_s1 }
   0x2   :  { %1971 = sst [smem:[#allocation26_spill]] %s1945_s4 }
   0x3   :  { %9 = vsyncpa [#allocation4], 0 }
   0x4   :  { %11 = vsyncpa [#allocation4 + $0x1], 0 }
   0x5   :  { %12 = vsyncpa [#allocation7], 0 }
   0x6   :  { %14 = vsyncpa [#allocation7 + $0x1], 0 }
   0x7   :  { %15 = vsyncpa [#allocation5], 0 }
   0x8   :  { %17 = vsyncpa [#allocation5 + $0x1], 0  ;;  %s1396_s15 = smov 0   ;;  %s1398_s16 = smov 0  }
   0x9   :  { %s1400_s17 = smov 0   ;;  %s1402_s18 = smov 0  }
   0xa   :  { %s1404_s19 = smov 0   ;;  %s1406_s20 = smov 0  }
   0xb   :  { %s1408_s21 = smov 0   ;;  %s1410_s22 = smov 0  }
   0xc   :  { %s1412_s23 = smov 0   ;;  %s1414_s24 = smov 0  }
   0xd   :  { %s1416_s25 = smov 0   ;;  %s1418_s26 = smov 0  }
   0xe   :  { %s1420_s27 = smov 0   ;;  %s1422_s28 = smov 0  }
   0xf LB: > { %1972 = sst [smem:[#allocation13_spill]] %s1306_s15  ;;  %s1465_s29 = sadd.s32 4294967295, %s1358_s28   ;;  %s1358_s28 = sphi %s1422_s28, %s23_s28   ;;  %s1354_s27 = sphi %s1420_s27, %s2021_s27   ;;  %s1350_s26 = sphi %s1418_s26, %s2020_s26   ;;  %s1346_s25 = sphi %s1416_s25, %s2030_s25   ;;  %s1342_s24 = sphi %s1414_s24, %s2018_s24   ;;  %s1338_s23 = sphi %s1412_s23, %s2029_s23   ;;  %s1334_s22 = sphi %s1410_s22, %s2028_s22   ;;  %s1330_s21 = sphi %s1408_s21, %s2027_s21   ;;  %s1326_s20 = sphi %s1406_s20, %s2026_s20   ;;  %s1322_s19 = sphi %s1404_s19, %s2025_s19   ;;  %s1318_s18 = sphi %s1402_s18, %s2024_s18   ;;  %s1314_s17 = sphi %s1400_s17, %s2015_s17   ;;  %s1310_s16 = sphi %s1398_s16, %s2023_s16   ;;  %s1306_s15 = sphi %s1396_s15, %s2022_s15  }
  0x10   : > { %1973 = sst [smem:[#allocation14_spill]] %s1314_s17  ;;  %s846_s30 = sadd.s32 4294967294, %s1358_s28  }
  0x11   : > { %1974 = sst [smem:[#allocation15_spill]] %s1326_s20  ;;  %s35_s5 = sadd.s32 1, %s1350_s26 }
  0x12   : > { %1975 = sst [smem:[#allocation16_spill]] %s1342_s24  ;;  %p36_p0 = scmp.ge.s32.totalorder %s35_s5, 2 }
  0x13   : > { %1976 = sst [smem:[#allocation17_spill]] %s1350_s26  ;;  %s38_s6 = sadd.s32 1, %s1354_s27 }
  0x14   : > { %1977 = sst [smem:[#allocation18_spill]] %s1354_s27  ;;  %p1958_p1 = scmp.eq.s32.totalorder %s1358_s28, 0 }
  0x15   : > { %p1957_p2 = scmp.eq.s32.totalorder %s1465_s29, 0  ;;  %s2032_s5 = smov (%p36_p0, %s35_s5), 0 }
  0x16   : > { %1978 = sst [smem:[#allocation19_spill]] %s2032_s5  ;;  %s2034_s6 = smov (!%p36_p0, %s38_s6), %s1354_s27 }
  0x17   : > { %s79_s7 = sadd.s32 1, %s1326_s20  ;;  %p86_p3 = scmp.ne.s32.totalorder %s1326_s20, %s1322_s19 }
  0x18   : > { %p40_p4 = scmp.ge.s32.totalorder %s2034_s6, 2  ;;  %s1480_s8 = ssub.s32 %s1350_s26, %s2032_s5 }
  0x19   : > { %p1484_p5 = por %p86_p3, %p1958_p1  ;;  %p92_p6 = scmp.ne.s32.totalorder %s1322_s19, %s1318_s18 }
  0x1a   : > { %s2036_s6 = smov (%p40_p4, %s2034_s6), 0  ;;  %s161_s11 = sadd.s32 1, %s1314_s17 }
  0x1b   : > { %1980 = sst [smem:[#allocation20_spill]] %s2036_s6  ;;  %p1493_p7 = por %p92_p6, %p1957_p2 }
  0x1c   : > { %s74_s12 = ssub.s32 %s1354_s27, %s2036_s6  ;;  %p171_p8 = scmp.ne.s32.totalorder %s1314_s17, %s1310_s16 }
  0x1d   : > { %s1981_s10 = scalar_select %p1493_p7, 1, 0 }
  0x1e   : > { %s76_s13 = sor.u32 %s74_s12, %s1480_s8  ;;  %p159_p9 = scmp.eq.s32.totalorder %s74_s12, 0 }
  0x1f   : > { %p77_p10 = scmp.eq.s32.totalorder %s76_s13, 0  ;;  %p172_p11 = scmp.eq.s32.totalorder %s1465_s29, 3 }
  0x20   : > { %s1505_s14 = scalar_select %p159_p9, %s1314_s17, %s161_s11  }
  0x21   : > { %s1508_s18 = scalar_select %p77_p10, %s1326_s20, %s79_s7  }
  0x22   : > { %1982 = sst [smem:[#allocation21_spill]] %s1505_s14  ;;  %p1510_p12 = por %p172_p11, %p171_p8 }
  0x23   : > { %1983 = sst [smem:[#allocation22_spill]] %s1508_s18  ;;  %p177_p13 = scmp.ne.s32.totalorder %s1310_s16, %s1306_s15 }
  0x24   : > { %s1984_s5 = scalar_select %p1510_p12, 1, 0 }
  0x25   : > { %p178_p0 = scmp.eq.s32.totalorder %s846_s30, 3  ;;  %p1956_p3 = scmp.lt.s32.totalorder %s1358_s28, 4 }
  0x26   : > { %1985 = sst [smem:[#allocation23_spill]] %s1984_s5  ;;  %s222_s12 = sand.u32 1, %s1358_s28  }
  0x27   : > { %p1517_p4 = por %p178_p0, %p177_p13  ;;  %s224_s13 = sand.u32 1, %s1326_s20  }
  0x28   : > { %s1523_s11 = sshll.u32 %s224_s13, 9  ;;  %s854_s7 = sshll.u32 %s1350_s26, 1 }
  0x29   : > { %s1986_s6 = scalar_select %p1517_p4, 1, 0 }
  0x2a   : > { %s876_s18 = sshll.u32 %s1354_s27, 7  ;;  %s226_s17 = scalar_lea.vmem [#allocation6], %s1523_s11 }
  0x2b   : > { %1987 = sst [smem:[#allocation24_spill]] %s1986_s6  ;;  %s233_s14 = sadd.s32 %s876_s18, %s854_s7 }
  0x2c   : > { %s236_s4 = sshll.u32 %s226_s17, 4  ;;  %s856_s5 = sshll.u32 %s233_s14, 7  ;;  %s1528_s4 = int_to_ptr.vmem [resolvable:$true] %s236_s4 }
  0x2d   : > { %s1988_s1 = sld [smem:[#allocation25_spill]]  ;;  %p1539_p6 = pnand %p1956_p3, %p1484_p5 }
  0x2e   : > { %s1547_s18 = scalar_lea.hbm %s1943_s2, %s856_s5  ;;  %s1549_s15 = scalar_lea.sflag [#allocation7], %s222_s12 }
  0x2f   : > { %p1967_p10 = pneg %p1539_p6 }
  0x33   : > { %s1533_s24 = scalar_lea.hbm %s1988_s1, %s856_s5  ;;  %s1123_s27 = scalar_lea.hbm %s1988_s1, 32768 }
  0x34   : > { %s1118_s9 = scalar_lea.hbm %s1533_s24, 8192  ;;  %p1124_p13 = scmp.lt.u32.totalorder %s1533_s24, %s1988_s1 }
  0x35   : > { %p1119_p9 = scmp.ne.s32.totalorder %s1533_s24, %s1118_s9  ;;  %p1125_p0 = scmp.lt.u32.totalorder %s1123_s27, %s1118_s9 }
  0x36   : > { %p1127_p2 = scmp.lt.u32.totalorder %s1118_s9, %s1533_s24 }
  0x37   : > { %p1121_p5 = pnand %p1967_p10, %p1119_p9  ;;  %p1126_p3 = por %p1125_p0, %p1124_p13 }
  0x39   : > { %p1122_p11 = pneg %p1121_p5  ;;  %p1128_p1 = por %p1127_p2, %p1126_p3 }
  0x3b   : > { %p1129_p8 = pnand %p1128_p1, %p1122_p11 }
  0x3d   : > { %1132 = shalt.err (!%p1129_p8)
}
  0x3e   : > { %s1133_s5 = scalar_lea.vmem %s1528_s4, 8192  ;;  %s1360_s12 = smov [#allocation6]  }
  0x3f   : > { %p1134_p9 = scmp.ne.s32.totalorder %s1528_s4, %s1133_s5  ;;  %s1138_s17 = sshll.u32 %s1360_s12, 4  ;;  %s1139_s17 = int_to_ptr.vmem [resolvable:$false] %s1138_s17 }
  0x40   : > { %s1140_s20 = scalar_lea.vmem %s1139_s17, 16384  ;;  %p1141_p12 = scmp.lt.s32.totalorder %s1528_s4, %s1139_s17 }
  0x41   : > { %p1136_p5 = pnand %p1134_p9, %p1967_p10  ;;  %p1142_p13 = scmp.lt.s32.totalorder %s1140_s20, %s1133_s5 }
  0x43   : > { %p1137_p4 = pneg %p1136_p5  ;;  %p1143_p0 = por %p1142_p13, %p1141_p12 }
  0x45   : > { %p1144_p2 = pnand %p1143_p0, %p1137_p4 }
  0x47   : > { %1147 = shalt.err (!%p1144_p2)
}
  0x48   : > { %s1960_s27 = smov 512   ;;  %s1962_s6 = smov 256  }
  0x49   : > { %s1964_s14 = smov 16   ;;  %s250_s9 = scalar_lea.vmem [#allocation8], %s1523_s11 }
  0x4a   : > { %989 = dma.hbm_to_vmem [thread:$0]  (!%p1539_p6), %s1533_s24, 8192, %s1528_s4, %s1549_s15, %s1960_s27, %s1962_s6, %s1964_s14  }
  0x4b   : > { %s260_s7 = sshll.u32 %s250_s9, 4  ;;  %p862_p1 = scmp.ge.s32.totalorder %s1358_s28, 1  ;;  %s1618_s7 = int_to_ptr.vmem [resolvable:$true] %s260_s7 }
  0x4c   : > { %p276_p12 = scmp.lt.s32.totalorder %s1358_s28, 5  ;;  %s51_s5 = sadd.s32 1, %s1338_s23 }
  0x4d   : > { %p58_p4 = scmp.ne.s32.totalorder %s1338_s23, %s1334_s22  ;;  %p1991_p8 = scmp.eq.s32.totalorder %s1480_s8, 0 }
  0x4e   : > { %p1583_p3 = pnand %p862_p1, %p276_p12  ;;  %p1992_p11 = scmp.eq.s32.totalorder %s1358_s28, 0 }
  0x4f   : > { %s1593_s12 = scalar_select %p1991_p8, %s1338_s23, %s51_s5  }
  0x50   : > { %s1990_s30 = scalar_select %p1583_p3, 1, 0 }
  0x51   : > { %p60_p9 = por %p1992_p11, %p58_p4  ;;  %p64_p5 = scmp.ne.s32.totalorder %s1334_s22, %s1330_s21 }
  0x52   : > { %s198_s17 = sand.u32 1, %s1338_s23   ;;  %s875_s20 = sshll.u32 %s1350_s26, 8 }
  0x53   : > { %p1993_p13 = scmp.eq.s32.totalorder %s1465_s29, 0  ;;  %s849_s24 = sshll.u32 %s198_s17, 5 }
  0x54   : > { %s1610_s27 = scalar_lea.hbm %s1941_s0, %s875_s20  ;;  %p1995_p2 = scmp.lt.s32.totalorder %s1358_s28, 4 }
  0x55   : > { %p1603_p0 = por %p1993_p13, %p64_p5  ;;  %s202_s8 = scalar_lea.vmem [#allocation3], %s849_s24 }
  0x56   : > { %p1614_p1 = pnand %p1995_p2, %p60_p9  ;;  %s212_s5 = sshll.u32 %s202_s8, 4  ;;  %s1620_s5 = int_to_ptr.vmem [resolvable:$true] %s212_s5 }
  0x57   : > { %s1994_s4 = scalar_select %p1603_p0, 1, 0 }
  0x58   : > { %s1622_s11 = scalar_lea.sflag [#allocation4], %s198_s17  ;;  %s1148_s20 = scalar_lea.hbm %s1610_s27, 512 }
  0x59   : > { %p1149_p12 = scmp.ne.s32.totalorder %s1610_s27, %s1148_s20  ;;  %p1150_p4 = pneg %p1614_p1 }
  0x5a   : > { %s1153_s14 = scalar_lea.hbm %s1941_s0, 1024  ;;  %p1154_p9 = scmp.lt.u32.totalorder %s1610_s27, %s1941_s0 }
  0x5b   : > { %p1151_p8 = pnand %p1150_p4, %p1149_p12  ;;  %p1155_p5 = scmp.lt.u32.totalorder %s1153_s14, %s1148_s20 }
  0x5c   : > { %p1157_p2 = scmp.lt.u32.totalorder %s1148_s20, %s1610_s27 }
  0x5d   : > { %p1152_p11 = pneg %p1151_p8  ;;  %p1156_p13 = por %p1155_p5, %p1154_p9 }
  0x5f   : > { %p1158_p10 = por %p1157_p2, %p1156_p13 }
  0x61   : > { %p1159_p7 = pnand %p1158_p10, %p1152_p11 }
  0x63   : > { %1162 = shalt.err (!%p1159_p7)
}
  0x64   : > { %s1163_s17 = scalar_lea.vmem %s1620_s5, 512  ;;  %s1364_s6 = smov [#allocation3]  }
  0x65   : > { %p1164_p12 = scmp.ne.s32.totalorder %s1620_s5, %s1163_s17  ;;  %s1168_s24 = sshll.u32 %s1364_s6, 4  ;;  %s1169_s24 = int_to_ptr.vmem [resolvable:$false] %s1168_s24 }
  0x66   : > { %s1170_s1 = scalar_lea.vmem %s1169_s24, 1024  ;;  %p1171_p3 = scmp.lt.s32.totalorder %s1620_s5, %s1169_s24 }
  0x67   : > { %p1166_p8 = pnand %p1164_p12, %p1150_p4  ;;  %p1172_p9 = scmp.lt.s32.totalorder %s1170_s1, %s1163_s17 }
  0x69   : > { %p1167_p0 = pneg %p1166_p8  ;;  %p1173_p5 = por %p1172_p9, %p1171_p3 }
  0x6b   : > { %p1174_p13 = pnand %p1173_p5, %p1167_p0 }
  0x6d   : > { %1177 = shalt.err (!%p1174_p13)
}
  0x6e   : > { %s1997_s26 = smov 16   ;;  %s1998_s14 = smov 256  }
  0x6f   : > { %s1999_s8 = smov 512   ;;  %s1178_s20 = scalar_lea.hbm %s1547_s18, 8192 }
  0x70   : > { %986 = dma.hbm_to_vmem [thread:$0]  (!%p1614_p1), %s1610_s27, 512, %s1620_s5, %s1622_s11, %s1999_s8, %s1998_s14, %s1997_s26  }
  0x71   : > { %p1179_p7 = scmp.ne.s32.totalorder %s1547_s18, %s1178_s20  ;;  %p2000_p10 = pneg %p1539_p6 }
  0x72   : > { %s1183_s17 = scalar_lea.hbm %s1943_s2, 32768  ;;  %p1184_p4 = scmp.lt.u32.totalorder %s1547_s18, %s1943_s2 }
  0x73   : > { %p1181_p3 = pnand %p1179_p7, %p2000_p10  ;;  %p1185_p11 = scmp.lt.u32.totalorder %s1183_s17, %s1178_s20 }
  0x74   : > { %p1187_p12 = scmp.lt.u32.totalorder %s1178_s20, %s1547_s18 }
  0x75   : > { %p1182_p0 = pneg %p1181_p3  ;;  %p1186_p2 = por %p1185_p11, %p1184_p4 }
  0x77   : > { %p1188_p8 = por %p1187_p12, %p1186_p2 }
  0x79   : > { %p1189_p9 = pnand %p1188_p8, %p1182_p0 }
  0x7b   : > { %1192 = shalt.err (!%p1189_p9)
}
  0x7c   : > { %s1193_s27 = scalar_lea.vmem %s1618_s7, 8192  ;;  %p2001_p5 = pmov %p2000_p10 }
  0x7d   : > { %p1194_p1 = scmp.ne.s32.totalorder %s1618_s7, %s1193_s27  ;;  %s1365_s5 = smov [#allocation8]  }
  0x7e   : > { %s1198_s11 = sshll.u32 %s1365_s5, 4  ;;  %s1199_s11 = int_to_ptr.vmem [resolvable:$false] %s1198_s11 }
  0x7f   : > { %p1196_p13 = pnand %p1194_p1, %p2001_p5  ;;  %s1200_s1 = scalar_lea.vmem %s1199_s11, 16384 }
  0x80   : > { %p1201_p10 = scmp.lt.s32.totalorder %s1618_s7, %s1199_s11  ;;  %p1202_p3 = scmp.lt.s32.totalorder %s1200_s1, %s1193_s27 }
  0x81   : > { %p1197_p7 = pneg %p1196_p13 }
  0x82   : > { %p1203_p4 = por %p1202_p3, %p1201_p10 }
  0x84   : > { %p1204_p11 = pnand %p1203_p4, %p1197_p7 }
  0x86   : > { %1207 = shalt.err (!%p1204_p11)
}
  0x87   : > { %992 = dma.hbm_to_vmem [thread:$0]  (!%p1539_p6), %s1547_s18, 8192, %s1618_s7, %s1549_s15, %s1999_s8, %s1998_s14, %s1997_s26  }
  0x88   : > { %p2002_p0 = scmp.ne.s32.totalorder %s1990_s30, 0 }
  0x89   : > { %s282_s20 = sand.u32 (!%p2002_p0), 1, %s1334_s22   ;;  %p2003_p2 = scmp.ne.s32.totalorder (!%p2002_p0), %s1994_s4, 0 }
  0x8a   : > { %280 = sbr.rel (%p2002_p0) target bundleno = 558 (0x22e), region = 36  ;;  %s863_s9 = sshll.u32 (!%p2002_p0), %s282_s20, 5 }
  0x8b   : > { %s283_s21 = scalar_lea.sflag (!%p2002_p0), [#allocation4], %s282_s20  ;;  %s1683_s17 = scalar_lea.vmem (!%p2002_p0), [#allocation3], %s863_s9 }
  0x91   : > { %1293 = dma.done.wait (%p2003_p2), %s283_s21, 512  }
  0x92   : > { %1295 = vsyncadd (%p2003_p2), %s283_s21, 4294966784  ;;  %s291_s13 = sand.u32 1, %s1465_s29   ;;  %s293_s18 = sand.u32 1, %s1322_s19  }
  0x93   : > { %s864_s15 = sshll.u32 %s293_s18, 9  ;;  %s292_s7 = scalar_lea.sflag [#allocation7], %s291_s13 }
  0x94   : > { %s1691_s30 = scalar_lea.vmem [#allocation6], %s864_s15  ;;  %p2004_p6 = scmp.ne.s32.totalorder %s1981_s10, 0 }
  0x96   : > { %1297 = dma.done.wait (%p2004_p6), %s292_s7, 16384  }
  0x97   : > { %1299 = vsyncadd (%p2004_p6), %s292_s7, 4294950912  ;;  %s340_s26 = sand.u32 1, %s1310_s16   ;;  %s867_s14 = sshll.u32 %s1346_s25, 1 }
  0x98   : > { %s866_s4 = sshll.u32 %s340_s26, 5  ;;  %p350_p12 = scmp.lt.s32.totalorder %s867_s14, 3 }
  0x99   : > { %s1707_s24 = scalar_lea.vmem [#allocation8], %s864_s15  ;;  %s1709_s27 = scalar_lea.vmem [#allocation9], %s866_s4 }
  0x9a   : > { %s2038_s14 = smov (!%p350_p12, %s867_s14), 3  ;;  %s2005_s10 = sld [smem:[#allocation16_spill]] }
  0x9b   : > { %s352_s6 = scalar_lea.vmem %s1944_s3, %s2038_s14 }
  0xa0   : > { %p868_p8 = scmp.ne.s32.totalorder %s2005_s10, 0 }
  0xa1   : > { %v1366_v0 = vmov (!%p868_p8), 0.0  }
  0xa2   : > { %359 = sbr.rel (%p868_p8) target bundleno = 169 (0xa9), region = 52  ;;  %360 = vst [vmem:[#allocation2] sm:$0xff] (!%p868_p8), %v1366_v0  ;;  %361 = vst [vmem:[#allocation2 + $0x8] sm:$0xff] (!%p868_p8), %v1366_v0 }
  0xa3   : > { %362 = vst [vmem:[#allocation2 + $0x10] sm:$0xff] (!%p868_p8), %v1366_v0  ;;  %363 = vst [vmem:[#allocation2 + $0x18] sm:$0xff] (!%p868_p8), %v1366_v0 }
  0xa9 PF: > { %v365_v1 = vld [vmem:[%s1691_s30 + $0x8] sm:$0xff]  ;;  %v367_v2 = vld [vmem:[%s1691_s30 + $0x18] sm:$0xff]  ;;  %v364_v6 = vld [vmem:[%s1691_s30] sm:$0xff]  ;;  %s2006_s5 = sld [smem:[#allocation16_spill]] }
  0xaa   : > { %v429_v3 = vld [vmem:[%s1707_s24 + $0x8] sm:$0xff]  ;;  %v431_v4 = vld [vmem:[%s1707_s24 + $0x18] sm:$0xff]  ;;  %v366_v7 = vld [vmem:[%s1691_s30 + $0x10] sm:$0xff] }
  0xab   : > { %v493_v5 = vmul.f32 %v429_v3, %v365_v1  ;;  %v495_v8 = vmul.f32 %v431_v4, %v367_v2  ;;  %v428_v9 = vld [vmem:[%s1707_s24] sm:$0xff]  ;;  %v430_v10 = vld [vmem:[%s1707_s24 + $0x10] sm:$0xff]  ;;  %v369_v11 = vld [vmem:[%s1691_s30 + $0x28] sm:$0xff] }
  0xac   : > { %v492_v12 = vmul.f32 %v428_v9, %v364_v6  ;;  %v494_v13 = vmul.f32 %v430_v10, %v366_v7  ;;  %v371_v14 = vld [vmem:[%s1691_s30 + $0x38] sm:$0xff]  ;;  %v433_v15 = vld [vmem:[%s1707_s24 + $0x28] sm:$0xff]  ;;  %v368_v20 = vld [vmem:[%s1691_s30 + $0x20] sm:$0xff] }
  0xad   : > { %v435_v16 = vld [vmem:[%s1707_s24 + $0x38] sm:$0xff]  ;;  %v879_v17 = vpack.c.bf16 %v495_v8, %v493_v5  ;;  %v497_v18 = vmul.f32 %v433_v15, %v369_v11  ;;  %v370_v21 = vld [vmem:[%s1691_s30 + $0x30] sm:$0xff]  ;;  %v432_v22 = vld [vmem:[%s1707_s24 + $0x20] sm:$0xff] }
  0xae   : > { %v499_v19 = vmul.f32 %v435_v16, %v371_v14  ;;  %v881_v23 = vpack.c.bf16 %v494_v13, %v492_v12  ;;  %v434_v24 = vld [vmem:[%s1707_s24 + $0x30] sm:$0xff]  ;;  %v373_v25 = vld [vmem:[%s1691_s30 + $0x48] sm:$0xff]  ;;  %v375_v26 = vld [vmem:[%s1691_s30 + $0x58] sm:$0xff]  ;;  %v496_v30 = vmul.f32 %v432_v22, %v368_v20 }
  0xaf   : > { %880 = vmatprep.subr.bf16.mxu0 %v879_v17  ;;  %943 = vmatprep.subr.bf16.mxu1 %v879_v17  ;;  %v437_v28 = vld [vmem:[%s1707_s24 + $0x48] sm:$0xff]  ;;  %v439_v29 = vld [vmem:[%s1707_s24 + $0x58] sm:$0xff]  ;;  %v498_v31 = vmul.f32 %v434_v24, %v370_v21  ;;  %v372_v35 = vld [vmem:[%s1691_s30 + $0x40] sm:$0xff]  ;;  %p869_p9 = scmp.ne.s32.totalorder %s2006_s5, 1 }
  0xb0   : > { %v883_v27 = vpack.c.bf16 %v499_v19, %v497_v18  ;;  %882 = vmatpush1.bf16.xpose.msra.mxu0 %v881_v23  ;;  %959 = vmatpush1.bf16.xpose.msra.mxu1 %v881_v23  ;;  %v501_v32 = vmul.f32 %v437_v28, %v373_v25  ;;  %v503_v33 = vmul.f32 %v439_v29, %v375_v26  ;;  %v374_v36 = vld [vmem:[%s1691_s30 + $0x50] sm:$0xff]  ;;  %v436_v38 = vld [vmem:[%s1707_s24 + $0x40] sm:$0xff]  ;;  %v377_v40 = vld [vmem:[%s1691_s30 + $0x68] sm:$0xff] }
  0xb1   : > { %v885_v34 = vpack.c.bf16 %v498_v31, %v496_v30  ;;  %v438_v39 = vld [vmem:[%s1707_s24 + $0x50] sm:$0xff]  ;;  %v379_v41 = vld [vmem:[%s1691_s30 + $0x78] sm:$0xff]  ;;  %v441_v42 = vld [vmem:[%s1707_s24 + $0x68] sm:$0xff]  ;;  %v500_v44 = vmul.f32 %v436_v38, %v372_v35 }
  0xb2   : > { %884 = vmatprep.subr.bf16.mxu0 %v883_v27  ;;  %944 = vmatprep.subr.bf16.mxu1 %v883_v27  ;;  %v887_v37 = vpack.c.bf16 %v503_v33, %v501_v32  ;;  %v443_v43 = vld [vmem:[%s1707_s24 + $0x78] sm:$0xff]  ;;  %v502_v45 = vmul.f32 %v438_v39, %v374_v36  ;;  %v505_v46 = vmul.f32 %v441_v42, %v377_v40  ;;  %v376_v49 = vld [vmem:[%s1691_s30 + $0x60] sm:$0xff]  ;;  %v378_v50 = vld [vmem:[%s1691_s30 + $0x70] sm:$0xff] }
  0xb3   : > { %v507_v47 = vmul.f32 %v443_v43, %v379_v41  ;;  %v440_v52 = vld [vmem:[%s1707_s24 + $0x60] sm:$0xff]  ;;  %v442_v53 = vld [vmem:[%s1707_s24 + $0x70] sm:$0xff]  ;;  %v381_v54 = vld [vmem:[%s1691_s30 + $0x88] sm:$0xff] }
  0xb4   : > { %v889_v48 = vpack.c.bf16 %v502_v45, %v500_v44  ;;  %v383_v55 = vld [vmem:[%s1691_s30 + $0x98] sm:$0xff]  ;;  %v445_v56 = vld [vmem:[%s1707_s24 + $0x88] sm:$0xff]  ;;  %v504_v58 = vmul.f32 %v440_v52, %v376_v49  ;;  %v506_v59 = vmul.f32 %v442_v53, %v378_v50  ;;  %v380_v63 = vld [vmem:[%s1691_s30 + $0x80] sm:$0xff] }
  0xb5   : > { %v891_v51 = vpack.c.bf16 %v507_v47, %v505_v46  ;;  %v447_v57 = vld [vmem:[%s1707_s24 + $0x98] sm:$0xff]  ;;  %v509_v60 = vmul.f32 %v445_v56, %v381_v54  ;;  %v382_v0 = vld [vmem:[%s1691_s30 + $0x90] sm:$0xff]  ;;  %v444_v2 = vld [vmem:[%s1707_s24 + $0x80] sm:$0xff] }
  0xb6   : > { %v511_v61 = vmul.f32 %v447_v57, %v383_v55  ;;  %v893_v62 = vpack.c.bf16 %v506_v59, %v504_v58  ;;  %v446_v3 = vld [vmem:[%s1707_s24 + $0x90] sm:$0xff]  ;;  %v385_v4 = vld [vmem:[%s1691_s30 + $0xa8] sm:$0xff]  ;;  %v387_v5 = vld [vmem:[%s1691_s30 + $0xb8] sm:$0xff]  ;;  %v508_v8 = vmul.f32 %v444_v2, %v380_v63 }
  0xb7   : > { %v449_v6 = vld [vmem:[%s1707_s24 + $0xa8] sm:$0xff]  ;;  %v451_v7 = vld [vmem:[%s1707_s24 + $0xb8] sm:$0xff]  ;;  %v510_v9 = vmul.f32 %v446_v3, %v382_v0  ;;  %v384_v13 = vld [vmem:[%s1691_s30 + $0xa0] sm:$0xff] }
  0xb8   : > { %886 = vmatpush1.bf16.xpose.msra.mxu0 %v885_v34  ;;  %960 = vmatpush1.bf16.xpose.msra.mxu1 %v885_v34  ;;  %v895_v1 = vpack.c.bf16 %v511_v61, %v509_v60  ;;  %v513_v10 = vmul.f32 %v449_v6, %v385_v4  ;;  %v515_v11 = vmul.f32 %v451_v7, %v387_v5  ;;  %v386_v14 = vld [vmem:[%s1691_s30 + $0xb0] sm:$0xff]  ;;  %v448_v16 = vld [vmem:[%s1707_s24 + $0xa0] sm:$0xff]  ;;  %v389_v18 = vld [vmem:[%s1691_s30 + $0xc8] sm:$0xff] }
  0xb9   : > { %888 = vmatprep.subr.bf16.mxu0 %v887_v37  ;;  %945 = vmatprep.subr.bf16.mxu1 %v887_v37  ;;  %v897_v12 = vpack.c.bf16 %v510_v9, %v508_v8  ;;  %v450_v17 = vld [vmem:[%s1707_s24 + $0xb0] sm:$0xff]  ;;  %v391_v19 = vld [vmem:[%s1691_s30 + $0xd8] sm:$0xff]  ;;  %v453_v20 = vld [vmem:[%s1707_s24 + $0xc8] sm:$0xff]  ;;  %v512_v22 = vmul.f32 %v448_v16, %v384_v13 }
  0xba   : > { %v899_v15 = vpack.c.bf16 %v515_v11, %v513_v10  ;;  %v455_v21 = vld [vmem:[%s1707_s24 + $0xd8] sm:$0xff]  ;;  %v514_v23 = vmul.f32 %v450_v17, %v386_v14  ;;  %v517_v24 = vmul.f32 %v453_v20, %v389_v18  ;;  %v561_v26 = vld [vmem:[%s1683_s17 + $0x8] sm:$0xff]  ;;  %v388_v28 = vld [vmem:[%s1691_s30 + $0xc0] sm:$0xff] }
  0xbb   : > { %v519_v25 = vmul.f32 %v455_v21, %v391_v19  ;;  %v390_v29 = vld [vmem:[%s1691_s30 + $0xd0] sm:$0xff]  ;;  %628 = vmatprep.mubr.f32.mxu0 %v561_v26  ;;  %v563_v30 = vld [vmem:[%s1683_s17 + $0x18] sm:$0xff]  ;;  %v452_v32 = vld [vmem:[%s1707_s24 + $0xc0] sm:$0xff] }
  0xbc   : > { %v901_v27 = vpack.c.bf16 %v514_v23, %v512_v22  ;;  %v454_v33 = vld [vmem:[%s1707_s24 + $0xd0] sm:$0xff]  ;;  %v393_v34 = vld [vmem:[%s1691_s30 + $0xe8] sm:$0xff]  ;;  %634 = vmatprep.mubr.f32.mxu1 %v563_v30  ;;  %v395_v35 = vld [vmem:[%s1691_s30 + $0xf8] sm:$0xff]  ;;  %v516_v38 = vmul.f32 %v452_v32, %v388_v28 }
  0xbd   : > { %v903_v31 = vpack.c.bf16 %v519_v25, %v517_v24  ;;  %v457_v36 = vld [vmem:[%s1707_s24 + $0xe8] sm:$0xff]  ;;  %v459_v37 = vld [vmem:[%s1707_s24 + $0xf8] sm:$0xff]  ;;  %v518_v39 = vmul.f32 %v454_v33, %v390_v29  ;;  %v392_v43 = vld [vmem:[%s1691_s30 + $0xe0] sm:$0xff] }
  0xbe   : > { %v521_v40 = vmul.f32 %v457_v36, %v393_v34  ;;  %v523_v41 = vmul.f32 %v459_v37, %v395_v35  ;;  %v394_v44 = vld [vmem:[%s1691_s30 + $0xf0] sm:$0xff]  ;;  %v456_v46 = vld [vmem:[%s1707_s24 + $0xe0] sm:$0xff]  ;;  %v399_v49 = vld [vmem:[%s1691_s30 + $0x118] sm:$0xff] }
  0xbf   : > { %v905_v42 = vpack.c.bf16 %v518_v39, %v516_v38  ;;  %v458_v47 = vld [vmem:[%s1707_s24 + $0xf0] sm:$0xff]  ;;  %v461_v50 = vld [vmem:[%s1707_s24 + $0x108] sm:$0xff]  ;;  %v520_v52 = vmul.f32 %v456_v46, %v392_v43  ;;  %v396_v57 = vld [vmem:[%s1691_s30 + $0x100] sm:$0xff] }
  0xc0   : > { %890 = vmatpush1.bf16.xpose.msra.mxu0 %v889_v48  ;;  %961 = vmatpush1.bf16.xpose.msra.mxu1 %v889_v48  ;;  %v907_v45 = vpack.c.bf16 %v523_v41, %v521_v40  ;;  %v397_v48 = vld [vmem:[%s1691_s30 + $0x108] sm:$0xff]  ;;  %v522_v53 = vmul.f32 %v458_v47, %v394_v44  ;;  %v398_v58 = vld [vmem:[%s1691_s30 + $0x110] sm:$0xff]  ;;  %v460_v60 = vld [vmem:[%s1707_s24 + $0x100] sm:$0xff] }
  0xc1   : > { %892 = vmatprep.subr.bf16.mxu0 %v891_v51  ;;  %946 = vmatprep.subr.bf16.mxu1 %v891_v51  ;;  %v463_v51 = vld [vmem:[%s1707_s24 + $0x118] sm:$0xff]  ;;  %v525_v54 = vmul.f32 %v461_v50, %v397_v48  ;;  %v462_v61 = vld [vmem:[%s1707_s24 + $0x110] sm:$0xff]  ;;  %v465_v0 = vld [vmem:[%s1707_s24 + $0x128] sm:$0xff]  ;;  %v524_v2 = vmul.f32 %v460_v60, %v396_v57 }
  0xc2   : > { %v527_v55 = vmul.f32 %v463_v51, %v399_v49  ;;  %v909_v56 = vpack.c.bf16 %v522_v53, %v520_v52  ;;  %v403_v63 = vld [vmem:[%s1691_s30 + $0x138] sm:$0xff]  ;;  %v526_v3 = vmul.f32 %v462_v61, %v398_v58  ;;  %v400_v7 = vld [vmem:[%s1691_s30 + $0x120] sm:$0xff]  ;;  %v402_v8 = vld [vmem:[%s1691_s30 + $0x130] sm:$0xff] }
  0xc3   : > { %v464_v10 = vld [vmem:[%s1707_s24 + $0x120] sm:$0xff]  ;;  %v466_v11 = vld [vmem:[%s1707_s24 + $0x130] sm:$0xff]  ;;  %v407_v13 = vld [vmem:[%s1691_s30 + $0x158] sm:$0xff] }
  0xc4   : > { %v911_v59 = vpack.c.bf16 %v527_v55, %v525_v54  ;;  %v913_v6 = vpack.c.bf16 %v526_v3, %v524_v2  ;;  %v469_v14 = vld [vmem:[%s1707_s24 + $0x148] sm:$0xff]  ;;  %v528_v16 = vmul.f32 %v464_v10, %v400_v7  ;;  %v530_v17 = vmul.f32 %v466_v11, %v402_v8  ;;  %v404_v21 = vld [vmem:[%s1691_s30 + $0x140] sm:$0xff]  ;;  %v406_v22 = vld [vmem:[%s1691_s30 + $0x150] sm:$0xff] }
  0xc5   : > { %v468_v24 = vld [vmem:[%s1707_s24 + $0x140] sm:$0xff]  ;;  %v470_v25 = vld [vmem:[%s1707_s24 + $0x150] sm:$0xff]  ;;  %v409_v26 = vld [vmem:[%s1691_s30 + $0x168] sm:$0xff] }
  0xc6   : > { %v917_v20 = vpack.c.bf16 %v530_v17, %v528_v16  ;;  %v473_v28 = vld [vmem:[%s1707_s24 + $0x168] sm:$0xff]  ;;  %v475_v29 = vld [vmem:[%s1707_s24 + $0x178] sm:$0xff]  ;;  %v532_v30 = vmul.f32 %v468_v24, %v404_v21  ;;  %v408_v35 = vld [vmem:[%s1691_s30 + $0x160] sm:$0xff] }
  0xc7   : > { %v537_v32 = vmul.f32 %v473_v28, %v409_v26  ;;  %v410_v36 = vld [vmem:[%s1691_s30 + $0x170] sm:$0xff]  ;;  %v472_v38 = vld [vmem:[%s1707_s24 + $0x160] sm:$0xff]  ;;  %v413_v40 = vld [vmem:[%s1691_s30 + $0x188] sm:$0xff] }
  0xc8   : > { %894 = vmatpush1.bf16.xpose.msra.mxu0 %v893_v62  ;;  %962 = vmatpush1.bf16.xpose.msra.mxu1 %v893_v62  ;;  %v401_v62 = vld [vmem:[%s1691_s30 + $0x128] sm:$0xff]  ;;  %v474_v39 = vld [vmem:[%s1707_s24 + $0x170] sm:$0xff]  ;;  %v415_v41 = vld [vmem:[%s1691_s30 + $0x198] sm:$0xff]  ;;  %v536_v44 = vmul.f32 %v472_v38, %v408_v35 }
  0xc9   : > { %896 = vmatprep.subr.bf16.mxu0 %v895_v1  ;;  %947 = vmatprep.subr.bf16.mxu1 %v895_v1  ;;  %v467_v1 = vld [vmem:[%s1707_s24 + $0x138] sm:$0xff]  ;;  %v529_v4 = vmul.f32 %v465_v0, %v401_v62  ;;  %v412_v49 = vld [vmem:[%s1691_s30 + $0x180] sm:$0xff]  ;;  %v414_v50 = vld [vmem:[%s1691_s30 + $0x190] sm:$0xff] }
  0xca   : > { %v531_v5 = vmul.f32 %v467_v1, %v403_v63  ;;  %v479_v43 = vld [vmem:[%s1707_s24 + $0x198] sm:$0xff]  ;;  %v476_v52 = vld [vmem:[%s1707_s24 + $0x180] sm:$0xff]  ;;  %v478_v53 = vld [vmem:[%s1707_s24 + $0x190] sm:$0xff] }
  0xcb   : > { %v543_v47 = vmul.f32 %v479_v43, %v415_v41  ;;  %v417_v54 = vld [vmem:[%s1691_s30 + $0x1a8] sm:$0xff]  ;;  %v419_v55 = vld [vmem:[%s1691_s30 + $0x1b8] sm:$0xff]  ;;  %v540_v58 = vmul.f32 %v476_v52, %v412_v49  ;;  %v416_v63 = vld [vmem:[%s1691_s30 + $0x1a0] sm:$0xff]  ;;  %v659_v49 = vlaneseq (!%p869_p9) }
  0xcc   : > { %v915_v9 = vpack.c.bf16 %v531_v5, %v529_v4  ;;  %v483_v57 = vld [vmem:[%s1707_s24 + $0x1b8] sm:$0xff]  ;;  %v418_v0 = vld [vmem:[%s1691_s30 + $0x1b0] sm:$0xff]  ;;  %v480_v2 = vld [vmem:[%s1707_s24 + $0x1a0] sm:$0xff] }
  0xcd   : > { %v547_v61 = vmul.f32 %v483_v57, %v419_v55  ;;  %v482_v3 = vld [vmem:[%s1707_s24 + $0x1b0] sm:$0xff]  ;;  %v421_v4 = vld [vmem:[%s1691_s30 + $0x1c8] sm:$0xff]  ;;  %v423_v5 = vld [vmem:[%s1691_s30 + $0x1d8] sm:$0xff]  ;;  %v544_v8 = vmul.f32 %v480_v2, %v416_v63 }
  0xce   : > { %v487_v7 = vld [vmem:[%s1707_s24 + $0x1d8] sm:$0xff]  ;;  %v484_v16 = vld [vmem:[%s1707_s24 + $0x1c0] sm:$0xff]  ;;  %v486_v17 = vld [vmem:[%s1707_s24 + $0x1d0] sm:$0xff] }
  0xcf   : > { %v551_v11 = vmul.f32 %v487_v7, %v423_v5  ;;  %v491_v21 = vld [vmem:[%s1707_s24 + $0x1f8] sm:$0xff]  ;;  %v560_v35 = vld [vmem:[%s1683_s17] sm:$0xff]  ;;  %v558_v38 = vld [vmem:[#allocation2 + $0x10] sm:$0xff] }
  0xd0   : > { %898 = vmatpush1.bf16.xpose.msra.mxu0 %v897_v12  ;;  %963 = vmatpush1.bf16.xpose.msra.mxu1 %v897_v12  ;;  %v405_v12 = vld [vmem:[%s1691_s30 + $0x148] sm:$0xff] }
  0xd1   : > { %900 = vmatprep.subr.bf16.mxu0 %v899_v15  ;;  %948 = vmatprep.subr.bf16.mxu1 %v899_v15  ;;  %v471_v15 = vld [vmem:[%s1707_s24 + $0x158] sm:$0xff]  ;;  %v533_v18 = vmul.f32 %v469_v14, %v405_v12  ;;  %v422_v14 = vld [vmem:[%s1691_s30 + $0x1d0] sm:$0xff] }
  0xd2   : > { %v535_v19 = vmul.f32 %v471_v15, %v407_v13  ;;  %v420_v13 = vld [vmem:[%s1691_s30 + $0x1c0] sm:$0xff] }
  0xd4   : > { %v919_v23 = vpack.c.bf16 %v535_v19, %v533_v18  ;;  %v425_v18 = vld [vmem:[%s1691_s30 + $0x1e8] sm:$0xff]  ;;  %v427_v19 = vld [vmem:[%s1691_s30 + $0x1f8] sm:$0xff] }
  0xd8   : > { %902 = vmatpush1.bf16.xpose.msra.mxu0 %v901_v27  ;;  %964 = vmatpush1.bf16.xpose.msra.mxu1 %v901_v27  ;;  %v411_v27 = vld [vmem:[%s1691_s30 + $0x178] sm:$0xff] }
  0xd9   : > { %904 = vmatprep.subr.bf16.mxu0 %v903_v31  ;;  %949 = vmatprep.subr.bf16.mxu1 %v903_v31  ;;  %v534_v31 = vmul.f32 %v470_v25, %v406_v22  ;;  %v539_v33 = vmul.f32 %v475_v29, %v411_v27  ;;  %v548_v22 = vmul.f32 %v484_v16, %v420_v13  ;;  %v424_v27 = vld [vmem:[%s1691_s30 + $0x1e0] sm:$0xff]  ;;  %v426_v29 = vld [vmem:[%s1691_s30 + $0x1f0] sm:$0xff] }
  0xda   : > { %v555_v25 = vmul.f32 %v491_v21, %v427_v19 }
  0xdb   : > { %v921_v34 = vpack.c.bf16 %v534_v31, %v532_v30  ;;  %v923_v37 = vpack.c.bf16 %v539_v33, %v537_v32  ;;  %v488_v30 = vld [vmem:[%s1707_s24 + $0x1e0] sm:$0xff]  ;;  %v490_v31 = vld [vmem:[%s1707_s24 + $0x1f0] sm:$0xff] }
  0xdc   : > { %v552_v32 = vmul.f32 %v488_v30, %v424_v27  ;;  %v554_v33 = vmul.f32 %v490_v31, %v426_v29 }
  0xe0   : > { %906 = vmatpush1.bf16.xpose.msra.mxu0 %v905_v42  ;;  %965 = vmatpush1.bf16.xpose.msra.mxu1 %v905_v42  ;;  %v477_v42 = vld [vmem:[%s1707_s24 + $0x188] sm:$0xff] }
  0xe1   : > { %908 = vmatprep.subr.bf16.mxu0 %v907_v45  ;;  %950 = vmatprep.subr.bf16.mxu1 %v907_v45  ;;  %v538_v45 = vmul.f32 %v474_v39, %v410_v36  ;;  %v541_v46 = vmul.f32 %v477_v42, %v413_v40  ;;  %v562_v36 = vld [vmem:[%s1683_s17 + $0x10] sm:$0xff]  ;;  %v557_v39 = vld [vmem:[#allocation2 + $0x8] sm:$0xff]  ;;  %v559_v40 = vld [vmem:[#allocation2 + $0x18] sm:$0xff] }
  0xe3   : > { %v925_v48 = vpack.c.bf16 %v538_v45, %v536_v44  ;;  %v927_v51 = vpack.c.bf16 %v543_v47, %v541_v46 }
  0xe8   : > { %910 = vmatpush1.bf16.xpose.msra.mxu0 %v909_v56  ;;  %966 = vmatpush1.bf16.xpose.msra.mxu1 %v909_v56  ;;  %v481_v56 = vld [vmem:[%s1707_s24 + $0x1a8] sm:$0xff] }
  0xe9   : > { %912 = vmatprep.subr.bf16.mxu0 %v911_v59  ;;  %951 = vmatprep.subr.bf16.mxu1 %v911_v59  ;;  %v542_v59 = vmul.f32 %v478_v53, %v414_v50  ;;  %v545_v60 = vmul.f32 %v481_v56, %v417_v54  ;;  %v660_v50 = vshrl.u32 (!%p869_p9), %v659_v49, 7 }
  0xeb   : > { %v929_v62 = vpack.c.bf16 %v542_v59, %v540_v58  ;;  %v931_v1 = vpack.c.bf16 %v547_v61, %v545_v60  ;;  %v661_v53 = vsub.s32 (!%p869_p9), 0, %v660_v50  ;;  %v665_v54 = vsub.s32 (!%p869_p9), 1, %v660_v50 }
  0xf0   : > { %914 = vmatpush1.bf16.xpose.msra.mxu0 %v913_v6  ;;  %967 = vmatpush1.bf16.xpose.msra.mxu1 %v913_v6  ;;  %v485_v6 = vld [vmem:[%s1707_s24 + $0x1c8] sm:$0xff] }
  0xf1   : > { %916 = vmatprep.subr.bf16.mxu0 %v915_v9  ;;  %952 = vmatprep.subr.bf16.mxu1 %v915_v9  ;;  %v546_v9 = vmul.f32 %v482_v3, %v418_v0  ;;  %v549_v10 = vmul.f32 %v485_v6, %v421_v4 }
  0xf3   : > { %v933_v12 = vpack.c.bf16 %v546_v9, %v544_v8  ;;  %v935_v15 = vpack.c.bf16 %v551_v11, %v549_v10 }
  0xf8   : > { %918 = vmatpush1.bf16.xpose.msra.mxu0 %v917_v20  ;;  %968 = vmatpush1.bf16.xpose.msra.mxu1 %v917_v20  ;;  %v489_v20 = vld [vmem:[%s1707_s24 + $0x1e8] sm:$0xff] }
  0xf9   : > { %920 = vmatprep.subr.bf16.mxu0 %v919_v23  ;;  %953 = vmatprep.subr.bf16.mxu1 %v919_v23  ;;  %v550_v23 = vmul.f32 %v486_v17, %v422_v14  ;;  %v553_v24 = vmul.f32 %v489_v20, %v425_v18 }
  0xfb   : > { %v937_v26 = vpack.c.bf16 %v550_v23, %v548_v22  ;;  %v939_v28 = vpack.c.bf16 %v555_v25, %v553_v24 }
 0x100   : > { %922 = vmatpush1.bf16.xpose.msra.mxu0 %v921_v34  ;;  %969 = vmatpush1.bf16.xpose.msra.mxu1 %v921_v34  ;;  %v941_v34 = vpack.c.bf16 %v554_v33, %v552_v32 }
 0x101   : > { %924 = vmatprep.subr.bf16.mxu0 %v923_v37  ;;  %954 = vmatprep.subr.bf16.mxu1 %v923_v37  ;;  %v556_v37 = vld [vmem:[#allocation2] sm:$0xff] }
 0x108   : > { %926 = vmatpush1.bf16.xpose.msra.mxu0 %v925_v48  ;;  %970 = vmatpush1.bf16.xpose.msra.mxu1 %v925_v48 }
 0x109   : > { %928 = vmatprep.subr.bf16.mxu0 %v927_v51  ;;  %955 = vmatprep.subr.bf16.mxu1 %v927_v51  ;;  %v657_v51 = vld [vmem:[%s352_s6] sm:$0x3] (!%p869_p9) }
 0x10a   : > { %v662_v58 = vrot.slane (!%p869_p9), %v657_v51, %v661_v53  ;;  %v666_v59 = vrot.slane (!%p869_p9), %v657_v51, %v665_v54 }
 0x110   : > { %930 = vmatpush1.bf16.xpose.msra.mxu0 %v929_v62  ;;  %971 = vmatpush1.bf16.xpose.msra.mxu1 %v929_v62 }
 0x111   : > { %932 = vmatprep.subr.bf16.mxu0 %v931_v1  ;;  %956 = vmatprep.subr.bf16.mxu1 %v931_v1 }
 0x118   : > { %934 = vmatpush1.bf16.xpose.msra.mxu0 %v933_v12  ;;  %972 = vmatpush1.bf16.xpose.msra.mxu1 %v933_v12 }
 0x119   : > { %936 = vmatprep.subr.bf16.mxu0 %v935_v15  ;;  %957 = vmatprep.subr.bf16.mxu1 %v935_v15 }
 0x120   : > { %938 = vmatpush1.bf16.xpose.msra.mxu0 %v937_v26  ;;  %973 = vmatpush1.bf16.xpose.msra.mxu1 %v937_v26 }
 0x121   : > { %940 = vmatprep.subr.bf16.mxu0 %v939_v28  ;;  %958 = vmatprep.subr.bf16.mxu1 %v939_v28 }
 0x128   : > { %942 = vmatpush1.bf16.xpose.msra.mxu0 %v941_v34  ;;  %974 = vmatpush1.bf16.xpose.msra.mxu1 %v941_v34 }
 0x12f   : > { %629 = vmatmul.mubr.f32.vlgmr.msra.gmra.mrb[0].mxu0 %v560_v35  ;;  %635 = vmatmul.mubr.f32.vlgmr.msra.gmra.mrb[0].mxu1 %v562_v36 }
 0x200   : > { %652 = sbr.rel (%p869_p9) target bundleno = 529 (0x211), region = 56 }
 0x202   : > { %v630_v41 = vpop.f32.mrb[0].mxu0  ;;  %v636_v42 = vpop.f32.mrb[0].mxu1 }
 0x203   : > { %v641_v43 = vadd.f32 %v630_v41, %v556_v37  ;;  %v643_v44 = vadd.f32 %v636_v42, %v558_v38  ;;  %v632_v45 = vpop.f32.mrb[1].mxu0  ;;  %v638_v46 = vpop.f32.mrb[1].mxu1 }
 0x204   : > { %v642_v47 = vadd.f32 %v632_v45, %v557_v39  ;;  %v644_v48 = vadd.f32 %v638_v46, %v559_v40 }
 0x205   : > { %645 = vst [vmem:[#allocation2] sm:$0xff] %v641_v43  ;;  %647 = vst [vmem:[#allocation2 + $0x10] sm:$0xff] %v643_v44 }
 0x206   : > { %646 = vst [vmem:[#allocation2 + $0x8] sm:$0xff] %v642_v47  ;;  %648 = vst [vmem:[#allocation2 + $0x18] sm:$0xff] %v644_v48 }
 0x20c   : > { %v653_v52 = vld [vmem:[#allocation2] sm:$0xff]  ;;  %v655_v56 = vld [vmem:[#allocation2 + $0x10] sm:$0xff] }
 0x20d   : > { %v654_v55 = vld [vmem:[#allocation2 + $0x8] sm:$0xff]  ;;  %v656_v57 = vld [vmem:[#allocation2 + $0x18] sm:$0xff]  ;;  %v669_v60 = vadd.f32 %v662_v58, %v653_v52  ;;  %v671_v62 = vadd.f32 %v662_v58, %v655_v56 }
 0x20e   : > { %v670_v61 = vadd.f32 %v666_v59, %v654_v55  ;;  %v672_v63 = vadd.f32 %v666_v59, %v656_v57 }
 0x20f   : > { %673 = vst [vmem:[%s1709_s27] sm:$0xff] %v669_v60  ;;  %675 = vst [vmem:[%s1709_s27 + $0x10] sm:$0xff] %v671_v62 }
 0x210   : > { %674 = vst [vmem:[%s1709_s27 + $0x8] sm:$0xff] %v670_v61  ;;  %676 = vst [vmem:[%s1709_s27 + $0x18] sm:$0xff] %v672_v63 }
 0x211 PF: > { %s2007_s20 = sld [smem:[#allocation23_spill]]  ;;  %s878_s9 = sshll.u32 %s1346_s25, 8 }
 0x212   : > { %s2008_s13 = sld [smem:[#allocation26_spill]]  ;;  %s694_s15 = sshll.u32 %s1709_s27, 4  ;;  %s1861_s15 = int_to_ptr.vmem [resolvable:$true] %s694_s15 }
 0x213   : > { %s1865_s7 = scalar_lea.sflag [#allocation5], %s340_s26  ;;  %s1208_s30 = scalar_lea.vmem %s1861_s15, 512 }
 0x214   : > { %p1209_p1 = scmp.ne.s32.totalorder %s1861_s15, %s1208_s30  ;;  %s1367_s25 = smov [#allocation9]  }
 0x215   : > { %s1212_s4 = sshll.u32 %s1367_s25, 4  ;;  %s1213_s4 = int_to_ptr.vmem [resolvable:$false] %s1212_s4 }
 0x216   : > { %s1214_s14 = scalar_lea.vmem %s1213_s4, 1024  ;;  %p1215_p10 = scmp.lt.s32.totalorder %s1861_s15, %s1213_s4 }
 0x217   : > { %p2009_p5 = scmp.ne.s32.totalorder %s2007_s20, 0  ;;  %p1216_p3 = scmp.lt.s32.totalorder %s1214_s14, %s1208_s30 }
 0x218   : > { %s1858_s18 = scalar_lea.hbm %s2008_s13, %s878_s9 }
 0x219   : > { %p1210_p13 = pnand %p1209_p1, %p2009_p5  ;;  %p1217_p4 = por %p1216_p3, %p1215_p10 }
 0x21b   : > { %p1211_p7 = pneg %p1210_p13 }
 0x21d   : > { %p1218_p11 = pnand %p1217_p4, %p1211_p7 }
 0x21f   : > { %1221 = shalt.err (!%p1218_p11)
}
 0x220   : > { %s1222_s26 = scalar_lea.hbm %s1858_s18, 512  ;;  %s1226_s6 = scalar_lea.hbm %s2008_s13, 1024 }
 0x221   : > { %p1223_p0 = scmp.ne.s32.totalorder %s1858_s18, %s1222_s26  ;;  %p1227_p12 = scmp.lt.u32.totalorder %s1858_s18, %s2008_s13 }
 0x222   : > { %p1228_p8 = scmp.lt.u32.totalorder %s1226_s6, %s1222_s26  ;;  %p1230_p1 = scmp.lt.u32.totalorder %s1222_s26, %s1858_s18 }
 0x223   : > { %p1224_p2 = pnand %p1223_p0, %p2009_p5 }
 0x224   : > { %p1229_p9 = por %p1228_p8, %p1227_p12 }
 0x225   : > { %p1225_p6 = pneg %p1224_p2 }
 0x226   : > { %p1231_p13 = por %p1230_p1, %p1229_p9 }
 0x228   : > { %p1232_p7 = pnand %p1231_p13, %p1225_p6 }
 0x22a   : > { %1235 = shalt.err (!%p1232_p7)
}
 0x22b   : > { %s1368_s10 = smov 256   ;;  %s1369_s5 = smov 512  }
 0x22c   : > { %s1370_s11 = smov 16  }
 0x22d   : > { %981 = dma.vmem_to_hbm [thread:$0]  (%p2009_p5), %s1861_s15, 512, %s1858_s18, %s1865_s7, %s1368_s10, %s1369_s5, %s1370_s11  }
 0x22e PF: > { %s2010_s1 = sld [smem:[#allocation13_spill]]  ;;  %s2011_s9 = sld [smem:[#allocation24_spill]] }
 0x22f   : > { %p998_p10 = scmp.ge.s32.totalorder %s1358_s28, 2 }
 0x234   : > { %s709_s21 = sand.u32 1, %s2010_s1   ;;  %p2012_p3 = scmp.ne.s32.totalorder %s2011_s9, 0 }
 0x235   : > { %s710_s17 = scalar_lea.sflag [#allocation5], %s709_s21 }
 0x236   : > { %p994_p4 = pnand %p998_p10, %p2012_p3 }
 0x238   : > { %1301 = dma.done.wait (!%p994_p4), %s710_s17, 512  }
 0x239   : > { %1303 = vsyncadd (!%p994_p4), %s710_s17, 4294966784  ;;  %s23_s28 = sadd.s32 1, %s1358_s28   ;;  %s2014_s20 = sld [smem:[#allocation14_spill]] }
 0x23a   : > { %p1894_p11 = scmp.ge.s32.totalorder %s23_s28, 6   ;;  %s2015_s17 = sld [smem:[#allocation21_spill]] }
 0x23b   : > { %s2016_s7 = sld [smem:[#allocation15_spill]]  ;;  %s2017_s25 = sld [smem:[#allocation22_spill]] }
 0x23c   : > { %s2018_s24 = sld [smem:[#allocation17_spill]]  ;;  %s2019_s4 = sld [smem:[#allocation18_spill]] }
 0x23d   : > { %s2020_s26 = sld [smem:[#allocation19_spill]]  ;;  %s2021_s27 = sld [smem:[#allocation20_spill]] }
 0x23e   : > { %s2022_s15 = smov %s1310_s16  ;;  %s2024_s18 = smov %s1322_s19 }
 0x23f   : > { %s2023_s16 = smov %s2014_s20  ;;  %s2027_s21 = smov %s1334_s22 }
 0x240   : > { %s2028_s22 = smov %s1338_s23  ;;  %s2029_s23 = smov %s1593_s12 }
 0x241   : > { %s2025_s19 = smov %s2016_s7  ;;  %s2026_s20 = smov %s2017_s25 }
 0x242   : > { %s2030_s25 = smov %s2019_s4  ;;  %22 = sbr.rel (!%p1894_p11) target bundleno = 15 (0xf), region = 116 }
 0x249   :  { %715 = vsyncpa [#allocation4], 1 }
 0x24a   :  { %717 = vsyncpa [#allocation4 + $0x1], 1 }
 0x24b   :  { %718 = vsyncpa [#allocation7], 1 }
 0x24c   :  { %720 = vsyncpa [#allocation7 + $0x1], 1 }
 0x24d   :  { %721 = vsyncpa [#allocation5], 1 }
 0x24e   :  { %723 = vsyncpa [#allocation5 + $0x1], 1 }

</bundles_post_ra>
